<compile_context>
chip_gen: v7x
topology: tpu7x:2x2x1
jax: 0.10.0
libtpu: 0.0.40
codegen_flags: <defaults>
</compile_context>

<pallas_src>
import functools
import math

import jax
import jax.numpy as jnp
from jax.experimental import pallas as pl
from jax.experimental.pallas import tpu as pltpu

BN_EPS = 1e-5
BN_SCALE = 1.0 / math.sqrt(1.0 + BN_EPS)
VMEM_LIMIT_BYTES = 48 * 1024 * 1024       # < v7x's 64 MiB physical VMEM

INVERTED_RESIDUAL_SETTING = [
    [1, 16, 1, 1], [6, 24, 2, 2], [6, 32, 3, 2], [6, 64, 4, 2],
    [6, 96, 3, 1], [6, 160, 3, 2], [6, 320, 1, 1],
]


def _compiler_params():
    return pltpu.CompilerParams(dimension_semantics=("parallel",),
                                vmem_limit_bytes=VMEM_LIMIT_BYTES)


# ----------------------------------------------------------------------------
# Stem: im2col patches @ W  (+bias, ReLU6), tiled over rows.
# ----------------------------------------------------------------------------
def _mm_affine_kernel(x_ref, w_ref, b_ref, o_ref, *, relu6):
    y = jnp.dot(x_ref[...], w_ref[...], preferred_element_type=jnp.float32)
    y = y + b_ref[...]
    if relu6:
        y = jnp.clip(y, 0.0, 6.0)
    o_ref[...] = y.astype(o_ref.dtype)


def matmul_affine(x, w, bias, *, relu6, out_dtype=jnp.bfloat16, block_m=256):
    """y = act(x @ w + b); bf16 MXU operands, f32 accumulation, M-tiled grid."""
    M, K = x.shape
    N = w.shape[1]
    bm = M if M <= block_m else block_m
    Mp = ((M + bm - 1) // bm) * bm
    xb = x.astype(jnp.bfloat16)
    if Mp != M:
        xb = jnp.pad(xb, ((0, Mp - M), (0, 0)))
    out = pl.pallas_call(
        functools.partial(_mm_affine_kernel, relu6=relu6),
        out_shape=jax.ShapeDtypeStruct((Mp, N), out_dtype),
        grid_spec=pltpu.PrefetchScalarGridSpec(
            num_scalar_prefetch=0,
            grid=(Mp // bm,),
            in_specs=[pl.BlockSpec((bm, K), lambda i: (i, 0)),
                      pl.BlockSpec((K, N), lambda i: (0, 0)),
                      pl.BlockSpec((1, N), lambda i: (0, 0))],
            out_specs=pl.BlockSpec((bm, N), lambda i: (i, 0))),
        compiler_params=_compiler_params(),
    )(xb, w, bias)
    return out[:M] if Mp != M else out


def _stem_im2col(x_nhwc):
    # TODO(synk): the stem 3x3 tap extraction stays host-side JAX glue -- the
    # input only has 3 channels so the traffic is negligible; K is padded
    # 27 -> 32 for lane/MXU alignment.
    N, H, W, C = x_nhwc.shape
    Ho = (H - 1) // 2 + 1
    Wo = (W - 1) // 2 + 1
    xp = jnp.pad(x_nhwc, ((0, 0), (1, 1), (1, 1), (0, 0)))
    taps = [xp[:, kh:kh + 2 * (Ho - 1) + 1:2, kw:kw + 2 * (Wo - 1) + 1:2, :]
            for kh in range(3) for kw in range(3)]
    patches = jnp.concatenate(taps, axis=-1).reshape(N * Ho * Wo, 9 * C)
    patches = jnp.pad(patches, ((0, 0), (0, 5)))          # K: 27 -> 32
    return patches, Ho, Wo


# ----------------------------------------------------------------------------
# Fused inverted-residual block kernels (one pallas_call per block).
# ----------------------------------------------------------------------------
def _make_block_kernel_s1(H, W, Chid, use_res, has_expand):
    """expand 1x1 -> depthwise 3x3 (stride 1) -> project 1x1 [+residual]."""
    def kernel(*refs):
        if has_expand:
            (x_ref, we_ref, be_ref, wd_ref, bd_ref,
             wp_ref, bp_ref, o_ref, pad_ref) = refs
        else:
            (x_ref, wd_ref, bd_ref, wp_ref, bp_ref, o_ref, pad_ref) = refs
        x = x_ref[0]                                        # (H*W, Cin) bf16
        if has_expand:
            h = jnp.dot(x, we_ref[...], preferred_element_type=jnp.float32)
            h = jnp.clip(h + be_ref[...], 0.0, 6.0)         # (H*W, Chid) f32
        else:
            h = x.astype(jnp.float32)
        # Hidden activation stays in VMEM: zero-padded (H+2, W+2, Chid) scratch.
        pad_ref[...] = jnp.zeros_like(pad_ref)
        pad_ref[1:H + 1, 1:W + 1, :] = h.reshape(H, W, Chid)
        acc = jnp.zeros((H, W, Chid), jnp.float32)
        for kh in range(3):
            for kw in range(3):
                tap = pad_ref[kh:kh + H, kw:kw + W, :]
                acc = acc + tap * wd_ref[kh * 3 + kw:kh * 3 + kw + 1, :]
        hd = jnp.clip(acc.reshape(H * W, Chid) + bd_ref[...], 0.0, 6.0)
        y = jnp.dot(hd.astype(jnp.bfloat16), wp_ref[...],
                    preferred_element_type=jnp.float32) + bp_ref[...]
        if use_res:
            y = y + x.astype(jnp.float32)
        o_ref[0] = y.astype(o_ref.dtype)
    return kernel


def _make_block_kernel_s2(Ho, Wo, Chid, has_expand):
    """expand 1x1 -> depthwise 3x3 (stride 2) -> project 1x1.

    The wrapper pre-splits the input into the 4 stride-2 spatial phases
    (space-to-depth) so every 3x3 tap is a contiguous static slice of a
    per-phase padded VMEM scratch (no strided VMEM access in-kernel).
    """
    def kernel(*refs):
        if has_expand:
            (x_ref, we_ref, be_ref, wd_ref, bd_ref,
             wp_ref, bp_ref, o_ref, scr_ref) = refs
        else:
            (x_ref, wd_ref, bd_ref, wp_ref, bp_ref, o_ref, scr_ref) = refs
        scr_ref[...] = jnp.zeros_like(scr_ref)
        for ph in range(4):               # phase (a, b): rows a::2, cols b::2
            xp = x_ref[0, ph]                               # (Ho*Wo, Cin) bf16
            if has_expand:
                hp = jnp.dot(xp, we_ref[...],
                             preferred_element_type=jnp.float32)
                hp = jnp.clip(hp + be_ref[...], 0.0, 6.0)
            else:
                hp = xp.astype(jnp.float32)
            scr_ref[ph, 1:Ho + 1, 1:Wo + 1, :] = hp.reshape(Ho, Wo, Chid)
        acc = jnp.zeros((Ho, Wo, Chid), jnp.float32)
        for kh in range(3):
            for kw in range(3):
                # out(i,j) tap = hidden[2i+kh-1, 2j+kw-1]
                #   -> phase a=(kh+1)%2, b=(kw+1)%2; -1 offset only for k==0.
                ph = ((kh + 1) % 2) * 2 + ((kw + 1) % 2)
                rs = 0 if kh == 0 else 1
                cs = 0 if kw == 0 else 1
                tap = scr_ref[ph, rs:rs + Ho, cs:cs + Wo, :]
                acc = acc + tap * wd_ref[kh * 3 + kw:kh * 3 + kw + 1, :]
        hd = jnp.clip(acc.reshape(Ho * Wo, Chid) + bd_ref[...], 0.0, 6.0)
        y = jnp.dot(hd.astype(jnp.bfloat16), wp_ref[...],
                    preferred_element_type=jnp.float32) + bp_ref[...]
        o_ref[0] = y.astype(o_ref.dtype)
    return kernel


def inverted_residual(x, H, W, blk):
    """x: (N, H*W, Cin) bf16  ->  (N, Ho*Wo, Cout) bf16, one fused pallas_call."""
    N = x.shape[0]
    Cin, Chid, Cout = blk['cin'], blk['chid'], blk['cout']
    stride = blk['stride']
    has_expand = 'expand_w' in blk
    Ho = (H - 1) // stride + 1
    Wo = (W - 1) // stride + 1

    w_args, w_specs = [], []
    if has_expand:
        w_args += [blk['expand_w'], blk['expand_b']]
        w_specs += [pl.BlockSpec((Cin, Chid), lambda n: (0, 0)),
                    pl.BlockSpec((1, Chid), lambda n: (0, 0))]
    w_args += [blk['dw_w'], blk['dw_b'], blk['proj_w'], blk['proj_b']]
    w_specs += [pl.BlockSpec((9, Chid), lambda n: (0, 0)),
                pl.BlockSpec((1, Chid), lambda n: (0, 0)),
                pl.BlockSpec((Chid, Cout), lambda n: (0, 0)),
                pl.BlockSpec((1, Cout), lambda n: (0, 0))]

    if stride == 1:
        kernel = _make_block_kernel_s1(H, W, Chid, blk['use_res'], has_expand)
        x_in = x
        x_spec = pl.BlockSpec((1, H * W, Cin), lambda n: (n, 0, 0))
        scratch = [pltpu.VMEM((H + 2, W + 2, Chid), jnp.float32)]
    else:
        assert H % 2 == 0 and W % 2 == 0
        kernel = _make_block_kernel_s2(Ho, Wo, Chid, has_expand)
        # TODO(synk): stride-2 space-to-depth phase split is host-side layout
        # glue (one extra pass over x, no 9x blow-up); the MACs run in-kernel.
        xi = x.reshape(N, H, W, Cin)
        x_in = jnp.stack([xi[:, a::2, b::2, :] for a in (0, 1) for b in (0, 1)],
                         axis=1).reshape(N, 4, Ho * Wo, Cin)
        x_spec = pl.BlockSpec((1, 4, Ho * Wo, Cin), lambda n: (n, 0, 0, 0))
        scratch = [pltpu.VMEM((4, Ho + 1, Wo + 1, Chid), jnp.float32)]

    out = pl.pallas_call(
        kernel,
        out_shape=jax.ShapeDtypeStruct((N, Ho * Wo, Cout), jnp.bfloat16),
        grid_spec=pltpu.PrefetchScalarGridSpec(
            num_scalar_prefetch=0,
            grid=(N,),
            in_specs=[x_spec] + w_specs,
            out_specs=pl.BlockSpec((1, Ho * Wo, Cout), lambda n: (n, 0, 0)),
            scratch_shapes=scratch),
        compiler_params=_compiler_params(),
    )(x_in, *w_args)
    return out, Ho, Wo


# ----------------------------------------------------------------------------
# Fused head (1x1 conv -> ReLU6) + global mean pool + classifier Linear.
# ----------------------------------------------------------------------------
def _head_kernel(x_ref, wh_ref, bh_ref, wf_ref, bf_ref, o_ref):
    x = x_ref[0]                                            # (HW, Cin) bf16
    y = jnp.dot(x, wh_ref[...], preferred_element_type=jnp.float32)
    y = jnp.clip(y + bh_ref[...], 0.0, 6.0)                 # (HW, 1280) f32
    pooled = jnp.mean(y, axis=0, keepdims=True)             # x.mean(3).mean(2)
    # Dropout(p=0.2) is identity in eval mode.
    logits = jnp.dot(pooled.astype(jnp.bfloat16), wf_ref[...],
                     preferred_element_type=jnp.float32) + bf_ref[...]
    o_ref[0] = logits.astype(o_ref.dtype)


def head_pool_fc(x, head, fc):
    N, HW, Cin = x.shape
    Ch = head['w'].shape[1]
    Ncls = fc['w'].shape[1]
    out = pl.pallas_call(
        _head_kernel,
        out_shape=jax.ShapeDtypeStruct((N, 1, Ncls), jnp.float32),
        grid_spec=pltpu.PrefetchScalarGridSpec(
            num_scalar_prefetch=0,
            grid=(N,),
            in_specs=[pl.BlockSpec((1, HW, Cin), lambda n: (n, 0, 0)),
                      pl.BlockSpec((Cin, Ch), lambda n: (0, 0)),
                      pl.BlockSpec((1, Ch), lambda n: (0, 0)),
                      pl.BlockSpec((Ch, Ncls), lambda n: (0, 0)),
                      pl.BlockSpec((1, Ncls), lambda n: (0, 0))],
            out_specs=pl.BlockSpec((1, 1, Ncls), lambda n: (n, 0, 0))),
        compiler_params=_compiler_params(),
    )(x, head['w'], head['b'], fc['w'], fc['b'])
    return out.reshape(N, Ncls)


# ----------------------------------------------------------------------------
# Parameter construction (kaiming-style init mirroring _initialize_weights;
# BN scale 1/sqrt(1+eps) is folded into weights, matmul weights stored bf16).
# NOTE: the im2col/tap order here is (kh, kw, Cin); a real PyTorch weight
# (Cout, Cin, kh, kw) must be permuted to (kh, kw, Cin, Cout) before flatten.
# ----------------------------------------------------------------------------
def make_mobilenetv2_params(key, num_class=1000, width_multi=1):
    keys = iter(jax.random.split(key, 128))

    def normal(shape, std):
        return jax.random.normal(next(keys), shape, dtype=jnp.float32) * std

    in_c = int(32 * width_multi)
    last_c = int(1280 * width_multi) if width_multi > 1 else 1280

    params = {}
    # stem conv_bn(3, 32, stride=2); K padded 27 -> 32 with zero rows.
    w = normal((27, in_c), math.sqrt(2.0 / (9 * in_c))) * BN_SCALE
    params['stem'] = {'w': jnp.pad(w, ((0, 5), (0, 0))).astype(jnp.bfloat16),
                      'b': jnp.zeros((1, in_c), jnp.float32)}

    blocks = []
    for t, c, n, s_ in INVERTED_RESIDUAL_SETTING:
        out_c = int(c * width_multi)
        for i in range(n):
            stride = s_ if i == 0 else 1
            hid = round(in_c * t)
            blk = {'stride': stride, 'cin': in_c, 'chid': hid, 'cout': out_c,
                   'use_res': stride == 1 and in_c == out_c}
            if t != 1:
                blk['expand_w'] = (normal((in_c, hid), math.sqrt(2.0 / hid))
                                   * BN_SCALE).astype(jnp.bfloat16)
                blk['expand_b'] = jnp.zeros((1, hid), jnp.float32)
            blk['dw_w'] = (normal((9, hid), math.sqrt(2.0 / (9 * hid)))
                           * BN_SCALE)                      # f32 (VPU path)
            blk['dw_b'] = jnp.zeros((1, hid), jnp.float32)
            # projection has BN only in the expand_ratio == 1 branch (as in
            # the reference torch Sequential).
            proj_scale = BN_SCALE if t == 1 else 1.0
            blk['proj_w'] = (normal((hid, out_c), math.sqrt(2.0 / out_c))
                             * proj_scale).astype(jnp.bfloat16)
            blk['proj_b'] = jnp.zeros((1, out_c), jnp.float32)
            blocks.append(blk)
            in_c = out_c
    params['blocks'] = blocks

    params['head'] = {'w': (normal((in_c, last_c), math.sqrt(2.0 / last_c))
                            * BN_SCALE).astype(jnp.bfloat16),
                      'b': jnp.zeros((1, last_c), jnp.float32)}
    bound = 1.0 / math.sqrt(last_c)
    params['fc'] = {
        'w': normal((last_c, num_class),
                    math.sqrt(2.0 / num_class)).astype(jnp.bfloat16),
        'b': jax.random.uniform(next(keys), (1, num_class), jnp.float32,
                                -bound, bound)}
    return params


# ----------------------------------------------------------------------------
# Forward pass
# ----------------------------------------------------------------------------
def mobilenetv2_forward(params, x_nchw):
    x = jnp.transpose(x_nchw.astype(jnp.float32), (0, 2, 3, 1))  # NCHW -> NHWC
    N = x.shape[0]

    patches, H, W = _stem_im2col(x)
    stem = params['stem']
    y = matmul_affine(patches, stem['w'], stem['b'], relu6=True,
                      out_dtype=jnp.bfloat16)                 # (N*H*W, 32)
    x = y.reshape(N, H * W, stem['w'].shape[1])

    for blk in params['blocks']:
        x, H, W = inverted_residual(x, H, W, blk)

    return head_pool_fc(x, params['head'], params['fc'])      # (N, num_class)


# ----------------------------------------------------------------------------
if __name__ == "__main__":
    key = jax.random.PRNGKey(0)
    k_params, k_input = jax.random.split(key)

    num_class = 1000
    input_size = 32           # smallest size satisfying input_size % 32 == 0
    batch = 2

    params = make_mobilenetv2_params(k_params, num_class=num_class,
                                     width_multi=1)
    x = jax.random.normal(k_input, (batch, 3, input_size, input_size),
                          dtype=jnp.float32)

    logits = mobilenetv2_forward(params, x)
    logits = jax.block_until_ready(logits)

    assert logits.shape == (batch, num_class), logits.shape
    assert bool(jnp.all(jnp.isfinite(logits)))
    print("KERNEL_OK")
</pallas_src>

<mosaic_0001>
module attributes {stable_mosaic.version = 11 : i64} {
  func.func @_mm_affine_kernel(%arg0: i32, %arg1: memref<256x32xbf16, #tpu.memory_space<vmem>>, %arg2: memref<32x32xbf16, #tpu.memory_space<vmem>>, %arg3: memref<1x32xf32, #tpu.memory_space<vmem>>, %arg4: memref<256x32xbf16, #tpu.memory_space<vmem>>) attributes {dimension_semantics = [#tpu.dimension_semantics<parallel>], iteration_bounds = array<i64: 2>, scalar_prefetch = 0 : i64, scratch_operands = 0 : i64, tpu.core_type = #tpu.core_type<tc>, window_params = [{transform_indices = @transform_0, window_bounds = array<i64: 256, 32>}, {pipeline_mode = #tpu.pipeline_mode<synchronous>, transform_indices = @transform_1, window_bounds = array<i64: 32, 32>}, {pipeline_mode = #tpu.pipeline_mode<synchronous>, transform_indices = @transform_2, window_bounds = array<i64: 1, 32>}, {transform_indices = @transform_3, window_bounds = array<i64: 256, 32>}]} {
    %c0 = arith.constant 0 : index
    %c0_0 = arith.constant 0 : index
    %0 = vector.load %arg1[%c0, %c0_0] : memref<256x32xbf16, #tpu.memory_space<vmem>>, vector<256x32xbf16>
    %c0_1 = arith.constant 0 : index
    %c0_2 = arith.constant 0 : index
    %1 = vector.load %arg2[%c0_1, %c0_2] : memref<32x32xbf16, #tpu.memory_space<vmem>>, vector<32x32xbf16>
    %cst = arith.constant dense<0.000000e+00> : vector<256x32xf32>
    %2 = tpu.matmul %0, %1, %cst {dimension_numbers = #tpu.dot_dimension_numbers<[1], [0], [0], [1], [0, 0, 1, 1], [], []>} : vector<256x32xbf16>, vector<32x32xbf16>, vector<256x32xf32> -> vector<256x32xf32>
    %c0_3 = arith.constant 0 : index
    %c0_4 = arith.constant 0 : index
    %3 = vector.load %arg3[%c0_3, %c0_4] : memref<1x32xf32, #tpu.memory_space<vmem>>, vector<1x32xf32>
    %4 = vector.broadcast %3 : vector<1x32xf32> to vector<256x32xf32>
    %5 = arith.addf %2, %4 : vector<256x32xf32>
    %cst_5 = arith.constant 0.000000e+00 : f32
    %cst_6 = arith.constant 6.000000e+00 : f32
    %6 = vector.broadcast %cst_5 : f32 to vector<256x32xf32>
    %7 = arith.maximumf %6, %5 : vector<256x32xf32>
    %8 = vector.broadcast %cst_6 : f32 to vector<256x32xf32>
    %9 = arith.minimumf %8, %7 : vector<256x32xf32>
    %10 = arith.truncf %9 : vector<256x32xf32> to vector<256x32xbf16>
    %c0_7 = arith.constant 0 : index
    %c0_8 = arith.constant 0 : index
    %11 = vector.load %arg4[%c0_7, %c0_8] : memref<256x32xbf16, #tpu.memory_space<vmem>>, vector<256x32xbf16>
    tpu.vector_store %arg4[%c0_7, %c0_8], %10 {strides = array<i32>} : memref<256x32xbf16, #tpu.memory_space<vmem>>, vector<256x32xbf16>,
    return
  }
  func.func @transform_0(%arg0: i32) -> (i32, i32) {
    %c0_i32 = arith.constant 0 : i32
    %c0_i32_0 = arith.constant 0 : i32
    return %arg0, %c0_i32 : i32, i32
  }
  func.func @transform_1(%arg0: i32) -> (i32, i32) {
    %c0_i32 = arith.constant 0 : i32
    %c0_i32_0 = arith.constant 0 : i32
    %c0_i32_1 = arith.constant 0 : i32
    return %c0_i32, %c0_i32_0 : i32, i32
  }
  func.func @transform_2(%arg0: i32) -> (i32, i32) {
    %c0_i32 = arith.constant 0 : i32
    %c0_i32_0 = arith.constant 0 : i32
    %c0_i32_1 = arith.constant 0 : i32
    return %c0_i32, %c0_i32_0 : i32, i32
  }
  func.func @transform_3(%arg0: i32) -> (i32, i32) {
    %c0_i32 = arith.constant 0 : i32
    %c0_i32_0 = arith.constant 0 : i32
    return %arg0, %c0_i32 : i32, i32
  }
}

</mosaic_0001>

<bundles_post_ra>
// kernel: tpu_custom_call.1
= control target key start
LH: loop header
LB: loop body
LE: loop exit
PB: predicated region body
PF: predicated region fallthrough
CT: control target
= control target key end

     0   :  { %s1023_s12 = smov 0   ;;  %s1190_s0 = inlined_call_operand.vmem [shape: bf16[512,32], index: 0, kind: input, shape index: {}]   ;;  %s1191_s1 = inlined_call_operand.vmem [shape: bf16[32,32], index: 1, kind: input, shape index: {}]   ;;  %s1192_s2 = inlined_call_operand.vmem [shape: f32[1,32], index: 2, kind: input, shape index: {}]   ;;  %s1193_s3 = inlined_call_operand.vmem [shape: bf16[512,32], index: 3, kind: output, shape index: {}]  }
   0x1 LB: > { %s801_s13 = sadd.s32 4294967295, %s1001_s12   ;;  %p805_p0 = scmp.ge.s32.totalorder %s1001_s12, 1  ;;  %s1001_s12 = sphi %s1023_s12, %s13_s12  }
   0x2   : > { %p138_p1 = scmp.lt.s32.totalorder %s1001_s12, 3 }
   0x4   : > { %p139_p2 = pnand %p805_p0, %p138_p1 }
   0x5   : > { %v977_v0 = vld [vmem:[%s1191_s1] sm:$0xff] (!%p139_p2)   ;;  %s806_s16 = sshll.u32 (!%p139_p2), %s801_s13, 5  ;;  %v978_v1 = vld [vmem:[%s1191_s1 + $0x8] sm:$0xff] (!%p139_p2)   ;;  %vm310_vm0 = vcmask (!%p139_p2), 261120   ;;  %vm712_vm1 = vcmask (!%p139_p2), 257024  }
   0x6   : > { %142 = sbr.rel (%p139_p2) target bundleno = 268 (0x10c), region = 32  ;;  %p163_p3 = scmp.lt.s32.totalorder (!%p139_p2), %s806_s16, 63  ;;  %929 = vmatprep.subr.bf16.mxu0 (!%p139_p2), %v977_v0  ;;  %965 = vmatprep.subr.bf16.mxu1 (!%p139_p2), %v977_v0  ;;  %v1082_v18 = vld [vmem:[%s1192_s2] ss:$0 sm:$0xff] (!%p139_p2) }
   0x7   : > { %930 = vmatpush3.bf16.msra.mxu0 (!%p139_p2), %v977_v0  ;;  %967 = vmatpush3.bf16.msra.mxu1 (!%p139_p2), %v977_v0 }
   0x8   : > { %931 = vmatprep.subr.bf16.mxu0 (!%p139_p2), %v978_v1  ;;  %966 = vmatprep.subr.bf16.mxu1 (!%p139_p2), %v978_v1 }
   0xb   : > { %932 = vmatpush3.bf16.msra.mxu0 (!%p139_p2), %v978_v1  ;;  %968 = vmatpush3.bf16.msra.mxu1 (!%p139_p2), %v978_v1 }
   0xd   : > { %s1195_s16 = smov (!%p163_p3, %s806_s16), 63 }
   0xe   : > { %s807_s19 = sshll.u32 %s1195_s16, 2 }
   0xf   : > { %s1045_s22 = scalar_lea.vmem %s1190_s0, %s807_s19  ;;  %s1097_s27 = scalar_lea.vmem %s1193_s3, %s807_s19 }
  0x10   : > { %v979_v2 = vld [vmem:[%s1045_s22] sm:$0xff]   ;;  %v981_v4 = vld [vmem:[%s1045_s22 + $0x8] sm:$0xff]   ;;  %v983_v6 = vld [vmem:[%s1045_s22 + $0x10] sm:$0xff]  }
  0x11   : > { %v980_v3 = vld [vmem:[%s1045_s22 + $0x40] sm:$0xff]   ;;  %933 = vmatprep.mubr.msk.bf16.mxu0 %vm310_vm0, %v979_v2  ;;  %v982_v5 = vld [vmem:[%s1045_s22 + $0x48] sm:$0xff]   ;;  %v984_v7 = vld [vmem:[%s1045_s22 + $0x50] sm:$0xff]  }
  0x12   : > { %949 = vmatprep.mubr.msk.bf16.mxu1 %vm310_vm0, %v980_v3  ;;  %934 = vmatmul.mubr.msk.bf16.vlgmr.msra.gmra.mrb[0].mxu0 %vm310_vm0, %v981_v4  ;;  %v985_v8 = vld [vmem:[%s1045_s22 + $0x18] sm:$0xff]   ;;  %v987_v10 = vld [vmem:[%s1045_s22 + $0x20] sm:$0xff]   ;;  %v989_v12 = vld [vmem:[%s1045_s22 + $0x28] sm:$0xff]  }
  0x13   : > { %950 = vmatmul.mubr.msk.bf16.vlgmr.msra.gmra.mrb[0].mxu1 %vm310_vm0, %v982_v5  ;;  %937 = vmatprep.mubr.msk.bf16.mxu0 %vm310_vm0, %v983_v6  ;;  %v986_v9 = vld [vmem:[%s1045_s22 + $0x58] sm:$0xff]   ;;  %v988_v11 = vld [vmem:[%s1045_s22 + $0x60] sm:$0xff]   ;;  %v990_v13 = vld [vmem:[%s1045_s22 + $0x68] sm:$0xff]  }
  0x14   : > { %953 = vmatprep.mubr.msk.bf16.mxu1 %vm310_vm0, %v984_v7  ;;  %v991_v14 = vld [vmem:[%s1045_s22 + $0x30] sm:$0xff]   ;;  %v993_v16 = vld [vmem:[%s1045_s22 + $0x38] sm:$0xff]  }
  0x15   : > { %v992_v15 = vld [vmem:[%s1045_s22 + $0x70] sm:$0xff]   ;;  %v994_v17 = vld [vmem:[%s1045_s22 + $0x78] sm:$0xff]  }
  0x1a   : > { %938 = vmatmul.mubr.msk.bf16.gmra.mrb[4].mxu0 %vm310_vm0, %v985_v8 }
  0x1b   : > { %954 = vmatmul.mubr.msk.bf16.gmra.mrb[4].mxu1 %vm310_vm0, %v986_v9  ;;  %941 = vmatprep.mubr.msk.bf16.mxu0 %vm310_vm0, %v987_v10 }
  0x1c   : > { %957 = vmatprep.mubr.msk.bf16.mxu1 %vm310_vm0, %v988_v11 }
  0x22   : > { %942 = vmatmul.mubr.msk.bf16.gmra.mrb[8].mxu0 %vm310_vm0, %v989_v12 }
  0x23   : > { %958 = vmatmul.mubr.msk.bf16.gmra.mrb[8].mxu1 %vm310_vm0, %v990_v13  ;;  %945 = vmatprep.mubr.msk.bf16.mxu0 %vm310_vm0, %v991_v14 }
  0x24   : > { %961 = vmatprep.mubr.msk.bf16.mxu1 %vm310_vm0, %v992_v15 }
  0x2a   : > { %946 = vmatmul.mubr.msk.bf16.gmra.mrb[12].mxu0 %vm310_vm0, %v993_v16 }
  0x2b   : > { %962 = vmatmul.mubr.msk.bf16.gmra.mrb[12].mxu1 %vm310_vm0, %v994_v17 }
  0xe5   : > { %v935_v19 = vpop.f32.mrb[0].mxu0 }
  0xe6   : > { %v402_v20 = vadd.f32 %v935_v19, %v1082_v18  ;;  %v951_v21 = vpop.f32.mrb[0].mxu1  ;;  %v393_v22 = vpop.f32.mrb[1].mxu0 }
  0xe7   : > { %v466_v23 = vadd.f32 %v951_v21, %v1082_v18  ;;  %v394_v24 = vadd.f32 %v1082_v18, %v393_v22  ;;  %v457_v25 = vpop.f32.mrb[1].mxu1  ;;  %v936_v26 = vpop.f32.mrb[2].mxu0 }
  0xe8   : > { %v522_v27 = vmax.f32 %v402_v20, 0.0  ;;  %v458_v28 = vadd.f32 %v1082_v18, %v457_v25  ;;  %v405_v29 = vadd.f32 %v936_v26, %v1082_v18  ;;  %v952_v30 = vpop.f32.mrb[2].mxu1  ;;  %v396_v31 = vpop.f32.mrb[3].mxu0 }
  0xe9   : > { %v538_v32 = vmax.f32 %v466_v23, 0.0  ;;  %v520_v33 = vmax.f32 %v394_v24, 0.0  ;;  %v469_v34 = vadd.f32 %v952_v30, %v1082_v18  ;;  %v397_v35 = vadd.f32 %v1082_v18, %v396_v31  ;;  %v460_v36 = vpop.f32.mrb[3].mxu1 }
  0xea   : > { %v554_v37 = vmin.f32 %v522_v27, 6.0  ;;  %v536_v38 = vmax.f32 %v458_v28, 0.0  ;;  %v523_v39 = vmax.f32 %v405_v29, 0.0  ;;  %v461_v40 = vadd.f32 %v1082_v18, %v460_v36 }
  0xeb   : > { %v570_v41 = vmin.f32 %v538_v32, 6.0  ;;  %v552_v42 = vmin.f32 %v520_v33, 6.0  ;;  %v539_v43 = vmax.f32 %v469_v34, 0.0  ;;  %v521_v44 = vmax.f32 %v397_v35, 0.0 }
  0xec   : > { %v881_v45 = vpack.c.bf16 %v554_v37, %v554_v37  ;;  %v568_v46 = vmin.f32 %v536_v38, 6.0  ;;  %v555_v47 = vmin.f32 %v523_v39, 6.0  ;;  %v537_v48 = vmax.f32 %v461_v40, 0.0 }
  0xed   : > { %v897_v49 = vpack.c.bf16 %v570_v41, %v570_v41  ;;  %v879_v50 = vpack.c.bf16 %v552_v42, %v552_v42  ;;  %v571_v51 = vmin.f32 %v539_v43, 6.0  ;;  %v553_v52 = vmin.f32 %v521_v44, 6.0  ;;  %v939_v53 = vpop.f32.mrb[4].mxu0 }
  0xee   : > { %715 = vst.msk [vmem:[%s1097_s27 + $0x8] sm:$0xf] %vm712_vm1, %v881_v45  ;;  %v895_v54 = vpack.c.bf16 %v568_v46, %v568_v46  ;;  %v882_v55 = vpack.c.bf16 %v555_v47, %v555_v47  ;;  %v569_v56 = vmin.f32 %v537_v48, 6.0  ;;  %v418_v57 = vadd.f32 %v939_v53, %v1082_v18  ;;  %v955_v58 = vpop.f32.mrb[4].mxu1  ;;  %v409_v59 = vpop.f32.mrb[5].mxu0 }
  0xef   : > { %731 = vst.msk [vmem:[%s1097_s27 + $0x48] sm:$0xf] %vm712_vm1, %v897_v49  ;;  %713 = vst.msk [vmem:[%s1097_s27] sm:$0xf] %vm712_vm1, %v879_v50  ;;  %v898_v60 = vpack.c.bf16 %v571_v51, %v571_v51  ;;  %v880_v61 = vpack.c.bf16 %v553_v52, %v553_v52  ;;  %v482_v62 = vadd.f32 %v955_v58, %v1082_v18  ;;  %v473_v0 = vpop.f32.mrb[5].mxu1  ;;  %v940_v1 = vpop.f32.mrb[6].mxu0 }
  0xf0   : > { %v410_v63 = vadd.f32 %v1082_v18, %v409_v59  ;;  %729 = vst.msk [vmem:[%s1097_s27 + $0x40] sm:$0xf] %vm712_vm1, %v895_v54  ;;  %716 = vst.msk [vmem:[%s1097_s27 + $0xc] sm:$0xf] %vm712_vm1, %v882_v55  ;;  %v896_v2 = vpack.c.bf16 %v569_v56, %v569_v56  ;;  %v526_v3 = vmax.f32 %v418_v57, 0.0  ;;  %v474_v4 = vadd.f32 %v1082_v18, %v473_v0  ;;  %v956_v6 = vpop.f32.mrb[6].mxu1 }
  0xf1   : > { %v421_v5 = vadd.f32 %v940_v1, %v1082_v18  ;;  %v412_v7 = vpop.f32.mrb[7].mxu0  ;;  %732 = vst.msk [vmem:[%s1097_s27 + $0x4c] sm:$0xf] %vm712_vm1, %v898_v60  ;;  %714 = vst.msk [vmem:[%s1097_s27 + $0x4] sm:$0xf] %vm712_vm1, %v880_v61  ;;  %v542_v8 = vmax.f32 %v482_v62, 0.0  ;;  %v485_v10 = vadd.f32 %v956_v6, %v1082_v18 }
  0xf2   : > { %v524_v9 = vmax.f32 %v410_v63, 0.0  ;;  %v413_v11 = vadd.f32 %v1082_v18, %v412_v7  ;;  %v476_v12 = vpop.f32.mrb[7].mxu1  ;;  %730 = vst.msk [vmem:[%s1097_s27 + $0x44] sm:$0xf] %vm712_vm1, %v896_v2  ;;  %v558_v13 = vmin.f32 %v526_v3, 6.0  ;;  %v540_v14 = vmax.f32 %v474_v4, 0.0 }
  0xf3   : > { %v527_v15 = vmax.f32 %v421_v5, 0.0  ;;  %v477_v16 = vadd.f32 %v1082_v18, %v476_v12  ;;  %v574_v17 = vmin.f32 %v542_v8, 6.0  ;;  %v543_v20 = vmax.f32 %v485_v10, 0.0 }
  0xf4   : > { %v556_v19 = vmin.f32 %v524_v9, 6.0  ;;  %v525_v21 = vmax.f32 %v413_v11, 0.0  ;;  %v885_v22 = vpack.c.bf16 %v558_v13, %v558_v13  ;;  %v572_v23 = vmin.f32 %v540_v14, 6.0 }
  0xf5   : > { %v559_v24 = vmin.f32 %v527_v15, 6.0  ;;  %v541_v25 = vmax.f32 %v477_v16, 0.0  ;;  %v901_v26 = vpack.c.bf16 %v574_v17, %v574_v17  ;;  %v575_v28 = vmin.f32 %v543_v20, 6.0  ;;  %v943_v30 = vpop.f32.mrb[8].mxu0 }
  0xf6   : > { %v883_v27 = vpack.c.bf16 %v556_v19, %v556_v19  ;;  %v557_v29 = vmin.f32 %v525_v21, 6.0  ;;  %719 = vst.msk [vmem:[%s1097_s27 + $0x18] sm:$0xf] %vm712_vm1, %v885_v22  ;;  %v899_v31 = vpack.c.bf16 %v572_v23, %v572_v23  ;;  %v434_v34 = vadd.f32 %v943_v30, %v1082_v18  ;;  %v959_v35 = vpop.f32.mrb[8].mxu1  ;;  %v425_v36 = vpop.f32.mrb[9].mxu0 }
  0xf7   : > { %v886_v32 = vpack.c.bf16 %v559_v24, %v559_v24  ;;  %v573_v33 = vmin.f32 %v541_v25, 6.0  ;;  %735 = vst.msk [vmem:[%s1097_s27 + $0x58] sm:$0xf] %vm712_vm1, %v901_v26  ;;  %v902_v37 = vpack.c.bf16 %v575_v28, %v575_v28  ;;  %v498_v39 = vadd.f32 %v959_v35, %v1082_v18  ;;  %v489_v41 = vpop.f32.mrb[9].mxu1  ;;  %v944_v42 = vpop.f32.mrb[10].mxu0 }
  0xf8   : > { %717 = vst.msk [vmem:[%s1097_s27 + $0x10] sm:$0xf] %vm712_vm1, %v883_v27  ;;  %v884_v38 = vpack.c.bf16 %v557_v29, %v557_v29  ;;  %v426_v40 = vadd.f32 %v1082_v18, %v425_v36  ;;  %733 = vst.msk [vmem:[%s1097_s27 + $0x50] sm:$0xf] %vm712_vm1, %v899_v31  ;;  %v530_v44 = vmax.f32 %v434_v34, 0.0  ;;  %v490_v45 = vadd.f32 %v1082_v18, %v489_v41  ;;  %v960_v47 = vpop.f32.mrb[10].mxu1 }
  0xf9   : > { %720 = vst.msk [vmem:[%s1097_s27 + $0x1c] sm:$0xf] %vm712_vm1, %v886_v32  ;;  %v900_v43 = vpack.c.bf16 %v573_v33, %v573_v33  ;;  %v437_v46 = vadd.f32 %v944_v42, %v1082_v18  ;;  %v428_v48 = vpop.f32.mrb[11].mxu0  ;;  %736 = vst.msk [vmem:[%s1097_s27 + $0x5c] sm:$0xf] %vm712_vm1, %v902_v37  ;;  %v546_v49 = vmax.f32 %v498_v39, 0.0  ;;  %v501_v51 = vadd.f32 %v960_v47, %v1082_v18 }
  0xfa   : > { %718 = vst.msk [vmem:[%s1097_s27 + $0x14] sm:$0xf] %vm712_vm1, %v884_v38  ;;  %v528_v50 = vmax.f32 %v426_v40, 0.0  ;;  %v429_v52 = vadd.f32 %v1082_v18, %v428_v48  ;;  %v492_v53 = vpop.f32.mrb[11].mxu1  ;;  %v562_v54 = vmin.f32 %v530_v44, 6.0  ;;  %v544_v55 = vmax.f32 %v490_v45, 0.0 }
  0xfb   : > { %734 = vst.msk [vmem:[%s1097_s27 + $0x54] sm:$0xf] %vm712_vm1, %v900_v43  ;;  %v531_v56 = vmax.f32 %v437_v46, 0.0  ;;  %v493_v57 = vadd.f32 %v1082_v18, %v492_v53  ;;  %v578_v58 = vmin.f32 %v546_v49, 6.0  ;;  %v547_v60 = vmax.f32 %v501_v51, 0.0 }
  0xfc   : > { %v560_v59 = vmin.f32 %v528_v50, 6.0  ;;  %v529_v61 = vmax.f32 %v429_v52, 0.0  ;;  %v889_v62 = vpack.c.bf16 %v562_v54, %v562_v54  ;;  %v576_v63 = vmin.f32 %v544_v55, 6.0 }
  0xfd   : > { %v563_v0 = vmin.f32 %v531_v56, 6.0  ;;  %v545_v1 = vmax.f32 %v493_v57, 0.0  ;;  %v905_v2 = vpack.c.bf16 %v578_v58, %v578_v58  ;;  %v579_v4 = vmin.f32 %v547_v60, 6.0  ;;  %v947_v6 = vpop.f32.mrb[12].mxu0 }
  0xfe   : > { %v887_v3 = vpack.c.bf16 %v560_v59, %v560_v59  ;;  %v561_v5 = vmin.f32 %v529_v61, 6.0  ;;  %723 = vst.msk [vmem:[%s1097_s27 + $0x28] sm:$0xf] %vm712_vm1, %v889_v62  ;;  %v903_v7 = vpack.c.bf16 %v576_v63, %v576_v63  ;;  %v450_v10 = vadd.f32 %v947_v6, %v1082_v18  ;;  %v963_v11 = vpop.f32.mrb[12].mxu1  ;;  %v441_v12 = vpop.f32.mrb[13].mxu0 }
  0xff   : > { %v890_v8 = vpack.c.bf16 %v563_v0, %v563_v0  ;;  %v577_v9 = vmin.f32 %v545_v1, 6.0  ;;  %739 = vst.msk [vmem:[%s1097_s27 + $0x68] sm:$0xf] %vm712_vm1, %v905_v2  ;;  %v906_v13 = vpack.c.bf16 %v579_v4, %v579_v4  ;;  %v514_v15 = vadd.f32 %v963_v11, %v1082_v18  ;;  %v505_v17 = vpop.f32.mrb[13].mxu1  ;;  %v948_v19 = vpop.f32.mrb[14].mxu0 }
 0x100   : > { %721 = vst.msk [vmem:[%s1097_s27 + $0x20] sm:$0xf] %vm712_vm1, %v887_v3  ;;  %v888_v14 = vpack.c.bf16 %v561_v5, %v561_v5  ;;  %v442_v16 = vadd.f32 %v1082_v18, %v441_v12  ;;  %737 = vst.msk [vmem:[%s1097_s27 + $0x60] sm:$0xf] %vm712_vm1, %v903_v7  ;;  %v534_v21 = vmax.f32 %v450_v10, 0.0  ;;  %v506_v22 = vadd.f32 %v1082_v18, %v505_v17  ;;  %v964_v24 = vpop.f32.mrb[14].mxu1 }
 0x101   : > { %724 = vst.msk [vmem:[%s1097_s27 + $0x2c] sm:$0xf] %vm712_vm1, %v890_v8  ;;  %v904_v20 = vpack.c.bf16 %v577_v9, %v577_v9  ;;  %v453_v23 = vadd.f32 %v948_v19, %v1082_v18  ;;  %v444_v25 = vpop.f32.mrb[15].mxu0  ;;  %740 = vst.msk [vmem:[%s1097_s27 + $0x6c] sm:$0xf] %vm712_vm1, %v906_v13  ;;  %v550_v26 = vmax.f32 %v514_v15, 0.0  ;;  %v517_v28 = vadd.f32 %v964_v24, %v1082_v18 }
 0x102   : > { %722 = vst.msk [vmem:[%s1097_s27 + $0x24] sm:$0xf] %vm712_vm1, %v888_v14  ;;  %v532_v27 = vmax.f32 %v442_v16, 0.0  ;;  %v445_v29 = vadd.f32 %v1082_v18, %v444_v25  ;;  %v508_v30 = vpop.f32.mrb[15].mxu1  ;;  %v566_v31 = vmin.f32 %v534_v21, 6.0  ;;  %v548_v32 = vmax.f32 %v506_v22, 0.0 }
 0x103   : > { %738 = vst.msk [vmem:[%s1097_s27 + $0x64] sm:$0xf] %vm712_vm1, %v904_v20  ;;  %v535_v33 = vmax.f32 %v453_v23, 0.0  ;;  %v509_v34 = vadd.f32 %v1082_v18, %v508_v30  ;;  %v582_v35 = vmin.f32 %v550_v26, 6.0  ;;  %v551_v37 = vmax.f32 %v517_v28, 0.0 }
 0x104   : > { %v564_v36 = vmin.f32 %v532_v27, 6.0  ;;  %v533_v38 = vmax.f32 %v445_v29, 0.0  ;;  %v893_v39 = vpack.c.bf16 %v566_v31, %v566_v31  ;;  %v580_v40 = vmin.f32 %v548_v32, 6.0 }
 0x105   : > { %v567_v41 = vmin.f32 %v535_v33, 6.0  ;;  %v549_v42 = vmax.f32 %v509_v34, 0.0  ;;  %v909_v43 = vpack.c.bf16 %v582_v35, %v582_v35  ;;  %v583_v45 = vmin.f32 %v551_v37, 6.0 }
 0x106   : > { %v891_v44 = vpack.c.bf16 %v564_v36, %v564_v36  ;;  %v565_v46 = vmin.f32 %v533_v38, 6.0  ;;  %727 = vst.msk [vmem:[%s1097_s27 + $0x38] sm:$0xf] %vm712_vm1, %v893_v39  ;;  %v907_v18 = vpack.c.bf16 %v580_v40, %v580_v40 }
 0x107   : > { %v894_v47 = vpack.c.bf16 %v567_v41, %v567_v41  ;;  %v581_v48 = vmin.f32 %v549_v42, 6.0  ;;  %743 = vst.msk [vmem:[%s1097_s27 + $0x78] sm:$0xf] %vm712_vm1, %v909_v43  ;;  %v910_v49 = vpack.c.bf16 %v583_v45, %v583_v45 }
 0x108   : > { %725 = vst.msk [vmem:[%s1097_s27 + $0x30] sm:$0xf] %vm712_vm1, %v891_v44  ;;  %v892_v50 = vpack.c.bf16 %v565_v46, %v565_v46  ;;  %741 = vst.msk [vmem:[%s1097_s27 + $0x70] sm:$0xf] %vm712_vm1, %v907_v18 }
 0x109   : > { %728 = vst.msk [vmem:[%s1097_s27 + $0x3c] sm:$0xf] %vm712_vm1, %v894_v47  ;;  %v908_v51 = vpack.c.bf16 %v581_v48, %v581_v48  ;;  %744 = vst.msk [vmem:[%s1097_s27 + $0x7c] sm:$0xf] %vm712_vm1, %v910_v49 }
 0x10a   : > { %726 = vst.msk [vmem:[%s1097_s27 + $0x34] sm:$0xf] %vm712_vm1, %v892_v50 }
 0x10b   : > { %742 = vst.msk [vmem:[%s1097_s27 + $0x74] sm:$0xf] %vm712_vm1, %v908_v51 }
 0x10c PF: > { %s13_s12 = sadd.s32 1, %s1001_s12  }
 0x10d   : > { %p10_p4 = scmp.ge.s32.totalorder %s13_s12, 4  }
 0x10f   :  { %12 = sbr.rel (!%p10_p4) target bundleno = 1 (0x1), region = 62 }

</bundles_post_ra>
